<compile_context>
chip_gen: v7x
topology: tpu7x:2x2x1
jax: 0.10.0
libtpu: 0.0.40
codegen_flags: <defaults>
</compile_context>

<pallas_src>
import functools

import jax
import jax.numpy as jnp
from jax.experimental import pallas as pl
from jax.experimental.pallas import tpu as pltpu

LANE = 128
TILE_BYTES_TARGET = 4 << 20          # ~4 MiB per block (x4 buffers ~= 16 MiB VMEM)
VMEM_LIMIT_BYTES = 32 * 1024 * 1024  # safe headroom on v5e/v6e/v7x
MIN_PALLAS_BYTES = 256 * 1024        # below this, plain XLA exp is cheaper


def _scale_exp_kernel(scale_ref, x_ref, o_ref, *, compute_dtype):
    # scale_ref: SMEM (1,) float32 parameter (whole array, same every step)
    # x_ref / o_ref: VMEM (tile_r, 128) tiles of the flattened input / output
    s = scale_ref[0].astype(compute_dtype)
    x = x_ref[...].astype(compute_dtype)
    # One VPU mul + one EUP exp per element; kernel is HBM-bandwidth bound.
    o_ref[...] = jnp.exp(x * s).astype(o_ref.dtype)


def _pick_compute_dtype(io_dtype):
    """bf16 math on v6e/v7x (packed vregs); f32 everywhere else (v5e has no
    bf16 VPU/EUP path)."""
    if io_dtype == jnp.bfloat16:
        try:
            kind = jax.devices()[0].device_kind.lower()
        except Exception:  # pragma: no cover - be conservative if query fails
            kind = ""
        if "v5" not in kind:
            return jnp.bfloat16
    return jnp.float32


def _scale_exp_xla(x, scale):
    """Plain-XLA fallback (one HBM read + one write; already at roofline)."""
    s = scale[0]
    return jnp.exp(x.astype(jnp.float32) * s).astype(x.dtype)


def scale_exp(x, scale, *, min_pallas_bytes=MIN_PALLAS_BYTES):
    """exp(x * scale) with scale a (1,) float32 parameter (ScaleExp.forward)."""
    orig_shape = x.shape
    dtype = x.dtype
    total = x.size
    itemsize = jnp.dtype(dtype).itemsize

    # Small tensors: pallas_call launch + DMA overhead exceeds a fused XLA op.
    # Ragged tensors (element count not a multiple of 128): the old pad+slice
    # path cost ~3x the bandwidth, so plain XLA is strictly better there too.
    if total * itemsize < min_pallas_bytes or total % LANE != 0:
        return _scale_exp_xla(x, scale)

    # Sublane granularity: 8 rows for 32-bit dtypes, 16 for 16-bit, 32 for 8-bit.
    sub = 8 * max(1, 4 // itemsize)

    rows = total // LANE
    x2d = x.reshape(rows, LANE)  # free reshape: contiguous, lane-dense

    # ~4 MiB tiles: near HBM roofline, fewer grid steps (each ~0.35 us of fixed
    # overhead), and 4 buffers x 4 MiB = 16 MiB fits the raised VMEM limit.
    target_rows = max(sub, TILE_BYTES_TARGET // (LANE * itemsize))
    if rows <= sub:
        tile_r = rows          # full-extent block (allowed even when < 8 rows)
    else:
        tile_r = min(target_rows, rows)
        tile_r = max(sub, (tile_r // sub) * sub)
        # Always give the pipeline (and v7x's two TensorCores) at least 2
        # blocks to work with; the last block may be partial (masked stores).
        if pl.cdiv(rows, tile_r) < 2:
            half = pl.cdiv(rows, 2)
            tile_r = max(sub, ((half + sub - 1) // sub) * sub)

    num_blocks = pl.cdiv(rows, tile_r)
    compute_dtype = _pick_compute_dtype(dtype)
    kernel = functools.partial(_scale_exp_kernel, compute_dtype=compute_dtype)

    out2d = pl.pallas_call(
        kernel,
        out_shape=jax.ShapeDtypeStruct((rows, LANE), dtype),
        grid=(num_blocks,),
        in_specs=[
            pl.BlockSpec(memory_space=pltpu.MemorySpace.SMEM),  # scale (1,)
            pl.BlockSpec((tile_r, LANE), lambda i: (i, 0)),     # x tile
        ],
        out_specs=pl.BlockSpec((tile_r, LANE), lambda i: (i, 0)),
        compiler_params=pltpu.CompilerParams(
            # "parallel" lets v7x shard the streaming tiles over both TCs;
            # harmless (measured-neutral) on single-TC v5e/v6e.
            dimension_semantics=("parallel",),
            vmem_limit_bytes=VMEM_LIMIT_BYTES,
        ),
        cost_estimate=pl.CostEstimate(
            flops=total,
            transcendentals=total,
            bytes_accessed=2 * total * itemsize,
        ),
    )(scale, x2d)

    return out2d.reshape(orig_shape)


if __name__ == "__main__":
    key = jax.random.PRNGKey(0)

    # Deterministic parameter init, matching nn.Parameter(torch.tensor([1.0])).
    scale = jnp.array([1.0], dtype=jnp.float32)

    # Small NCHW input consistent with FCOS head usage: (batch, channels, H, W).
    # Force the Pallas path (min_pallas_bytes=0) so the kernel itself runs even
    # though this tensor is below the small-tensor fallback threshold.
    x = jax.random.normal(key, (2, 4, 16, 16), dtype=jnp.float32)
    out = jax.block_until_ready(scale_exp(x, scale, min_pallas_bytes=0))
    ref = jnp.exp(x * scale[0])
    assert out.shape == x.shape and out.dtype == x.dtype
    assert jnp.allclose(out, ref, atol=1e-6, rtol=1e-6)

    # Multi-block Pallas path through the default threshold (1 MiB of f32).
    scale2 = jnp.array([0.5], dtype=jnp.float32)
    x2 = jax.random.normal(jax.random.PRNGKey(1), (2, 32, 32, 128),
                           dtype=jnp.float32)
    out2 = jax.block_until_ready(scale_exp(x2, scale2))
    assert jnp.allclose(out2, jnp.exp(x2 * scale2[0]), atol=1e-6, rtol=1e-6)

    # Ragged element count -> plain-XLA fallback (no pad/slice extra passes).
    x3 = jax.random.normal(jax.random.PRNGKey(2), (1, 3, 5, 7),
                           dtype=jnp.float32)
    out3 = jax.block_until_ready(scale_exp(x3, scale2))
    assert jnp.allclose(out3, jnp.exp(x3 * scale2[0]), atol=1e-6, rtol=1e-6)

    # bf16 I/O: bf16 math on v6e/v7x, f32 math on v5e; loose tolerance vs f32.
    xb = jax.random.normal(jax.random.PRNGKey(3), (2, 4, 16, 16),
                           dtype=jnp.bfloat16)
    outb = jax.block_until_ready(scale_exp(xb, scale, min_pallas_bytes=0))
    refb = jnp.exp(xb.astype(jnp.float32) * scale[0])
    assert outb.dtype == jnp.bfloat16
    assert jnp.allclose(outb.astype(jnp.float32), refb, atol=3e-2, rtol=3e-2)

    print("KERNEL_OK")
</pallas_src>

<mosaic_0001>
module attributes {stable_mosaic.version = 11 : i64} {
  func.func @_scale_exp_kernel(%arg0: i32, %arg1: memref<1xf32, #tpu.memory_space<smem>>, %arg2: memref<8x128xf32, #tpu.memory_space<vmem>>, %arg3: memref<8x128xf32, #tpu.memory_space<vmem>>) attributes {dimension_semantics = [#tpu.dimension_semantics<parallel>], iteration_bounds = array<i64: 2>, scalar_prefetch = 0 : i64, scratch_operands = 0 : i64, tpu.core_type = #tpu.core_type<tc>, window_params = [{transform_indices = @transform_0, window_bounds = array<i64: 1>}, {transform_indices = @transform_1, window_bounds = array<i64: 8, 128>}, {transform_indices = @transform_2, window_bounds = array<i64: 8, 128>}]} {
    %c0 = arith.constant 0 : index
    %0 = memref.load %arg1[%c0] : memref<1xf32, #tpu.memory_space<smem>>
    %c0_0 = arith.constant 0 : index
    %c0_1 = arith.constant 0 : index
    %1 = vector.load %arg2[%c0_0, %c0_1] : memref<8x128xf32, #tpu.memory_space<vmem>>, vector<8x128xf32>
    %2 = vector.broadcast %0 : f32 to vector<8x128xf32>
    %3 = arith.mulf %1, %2 : vector<8x128xf32>
    %4 = math.exp %3 : vector<8x128xf32>
    %c0_2 = arith.constant 0 : index
    %c0_3 = arith.constant 0 : index
    %5 = vector.load %arg3[%c0_2, %c0_3] : memref<8x128xf32, #tpu.memory_space<vmem>>, vector<8x128xf32>
    tpu.vector_store %arg3[%c0_2, %c0_3], %4 {strides = array<i32>} : memref<8x128xf32, #tpu.memory_space<vmem>>, vector<8x128xf32>,
    return
  }
  func.func @transform_0(%arg0: i32) -> i32 {
    %c0_i32 = arith.constant 0 : i32
    %c0_i32_0 = arith.constant 0 : i32
    return %c0_i32 : i32
  }
  func.func @transform_1(%arg0: i32) -> (i32, i32) {
    %c0_i32 = arith.constant 0 : i32
    %c0_i32_0 = arith.constant 0 : i32
    return %arg0, %c0_i32 : i32, i32
  }
  func.func @transform_2(%arg0: i32) -> (i32, i32) {
    %c0_i32 = arith.constant 0 : i32
    %c0_i32_0 = arith.constant 0 : i32
    return %arg0, %c0_i32 : i32, i32
  }
}

</mosaic_0001>

<bundles_post_ra>
// kernel: tpu_custom_call.1
= control target key start
LH: loop header
LB: loop body
LE: loop exit
PB: predicated region body
PF: predicated region fallthrough
CT: control target
= control target key end

     0   :  { %s590_s0 = inlined_call_operand.<no memory space> [shape: f32[1], index: 0, kind: input, shape index: {}]   ;;  %s591_s1 = inlined_call_operand.hbm [shape: f32[16,128], index: 1, kind: input, shape index: {}]   ;;  %s592_s2 = inlined_call_operand.hbm [shape: f32[16,128], index: 2, kind: output, shape index: {}]  }
   0x1   :  { %7 = sst [smem:[#allocation2]] %s590_s0 }
   0x2   :  { %8 = vsyncpa [#allocation4], 0 }
   0x3   :  { %10 = vsyncpa [#allocation4 + $0x1], 0 }
   0x4   :  { %11 = vsyncpa [#allocation5], 0 }
   0x5   :  { %13 = vsyncpa [#allocation5 + $0x1], 0  ;;  %s429_s11 = smov 0   ;;  %s431_s12 = smov 0  }
   0x6   :  { %s433_s13 = smov 0   ;;  %s435_s14 = smov 0  }
   0x7 LB: > { %s450_s0 = sadd.s32 4294967295, %s407_s14   ;;  %s251_s15 = sadd.s32 4294967294, %s407_s14   ;;  %s407_s14 = sphi %s435_s14, %s607_s14   ;;  %s403_s13 = sphi %s433_s13, %s606_s13   ;;  %s399_s12 = sphi %s431_s12, %s605_s12   ;;  %s395_s11 = sphi %s429_s11, %s604_s11  }
   0x8   : > { %s454_s16 = sadd.s32 1, %s407_s14   ;;  %s47_s17 = sadd.s32 1, %s403_s13 }
   0x9   : > { %s44_s18 = ssub.s32 %s407_s14, %s454_s16  ;;  %p54_p0 = scmp.ne.s32.totalorder %s403_s13, %s399_s12 }
   0xa   : > { %p45_p1 = scmp.eq.s32.totalorder %s44_s18, 0  ;;  %p55_p2 = scmp.eq.s32.totalorder %s407_s14, 0 }
   0xb   : > { %p60_p3 = scmp.ne.s32.totalorder %s399_s12, %s395_s11  ;;  %p61_p4 = scmp.eq.s32.totalorder %s450_s0, 0 }
   0xc   : > { %s466_s19 = scalar_select %p45_p1, %s403_s13, %s47_s17  }
   0xd   : > { %p468_p5 = por %p55_p2, %p54_p0  ;;  %p472_p6 = por %p61_p4, %p60_p3 }
   0xe   : > { %p84_p7 = scmp.eq.s32.totalorder %s450_s0, 1  ;;  %p90_p8 = scmp.eq.s32.totalorder %s251_s15, 1 }
   0xf   : > { %p275_p10 = scmp.lt.s32.totalorder %s407_s14, 2  ;;  %s113_s24 = sand.u32 1, %s403_s13  }
  0x10   : > { %p479_p11 = por %p84_p7, %p54_p0  ;;  %p483_p12 = por %p90_p8, %p60_p3 }
  0x11   : > { %s255_s25 = sshll.u32 %s407_s14, 7  ;;  %s254_s26 = sshll.u32 %s113_s24, 3 }
  0x12   : > { %s596_s22 = scalar_select %p479_p11, 1, 0 }
  0x13   : > { %s597_s23 = scalar_select %p483_p12, 1, 0 }
  0x14   : > { %s492_s29 = scalar_lea.hbm %s591_s1, %s255_s25  ;;  %s117_s30 = scalar_lea.vmem [#allocation3], %s254_s26 }
  0x15   : > { %s124_s3 = sshll.u32 %s117_s30, 4  ;;  %p496_p13 = pnand %p275_p10, %p468_p5  ;;  %s500_s3 = int_to_ptr.vmem [resolvable:$true] %s124_s3 }
  0x16   : > { %s114_s5 = scalar_lea.sflag [#allocation4], %s113_s24  ;;  %s311_s6 = scalar_lea.hbm %s492_s29, 128 }
  0x17   : > { %p312_p2 = scmp.ne.s32.totalorder %s492_s29, %s311_s6  ;;  %p313_p3 = pneg %p496_p13 }
  0x18   : > { %s316_s9 = scalar_lea.hbm %s591_s1, 256  ;;  %p317_p5 = scmp.lt.u32.totalorder %s492_s29, %s591_s1 }
  0x19   : > { %p314_p4 = pnand %p313_p3, %p312_p2  ;;  %p318_p8 = scmp.lt.u32.totalorder %s316_s9, %s311_s6 }
  0x1a   : > { %p320_p9 = scmp.lt.u32.totalorder %s311_s6, %s492_s29 }
  0x1b   : > { %p315_p7 = pneg %p314_p4  ;;  %p319_p10 = por %p318_p8, %p317_p5 }
  0x1d   : > { %p321_p0 = por %p320_p9, %p319_p10 }
  0x1f   : > { %p322_p1 = pnand %p321_p0, %p315_p7 }
  0x21   : > { %325 = shalt.err (!%p322_p1)
}
  0x22   : > { %s326_s17 = scalar_lea.vmem %s500_s3, 128  ;;  %s409_s18 = smov [#allocation3]  }
  0x23   : > { %p327_p2 = scmp.ne.s32.totalorder %s500_s3, %s326_s17  ;;  %s331_s20 = sshll.u32 %s409_s18, 4  ;;  %s332_s20 = int_to_ptr.vmem [resolvable:$false] %s331_s20 }
  0x24   : > { %s333_s24 = scalar_lea.vmem %s332_s20, 256  ;;  %p334_p11 = scmp.lt.s32.totalorder %s500_s3, %s332_s20 }
  0x25   : > { %p329_p4 = pnand %p327_p2, %p313_p3  ;;  %p335_p5 = scmp.lt.s32.totalorder %s333_s24, %s326_s17 }
  0x27   : > { %p330_p12 = pneg %p329_p4  ;;  %p336_p8 = por %p335_p5, %p334_p11 }
  0x29   : > { %p337_p9 = pnand %p336_p8, %p330_p12 }
  0x2b   : > { %340 = shalt.err (!%p337_p9)
}
  0x2c   : > { %270 = dma.hbm_to_vmem [thread:$0]  (!%p496_p13), %s492_s29, 128, %s500_s3, %s114_s5  }
  0x2d   : > { %p599_p0 = scmp.lt.s32.totalorder %s407_s14, 3  ;;  %p600_p1 = scmp.ge.s32.totalorder %s407_s14, 1 }
  0x2f   : > { %p130_p3 = pnand %p600_p1, %p599_p0 }
  0x30   : > { %s534_s25 = sand.u32 (!%p130_p3), 1, %s399_s12  }
  0x31   : > { %133 = sbr.rel (%p130_p3) target bundleno = 93 (0x5d), region = 28  ;;  %s257_s26 = sshll.u32 (!%p130_p3), %s534_s25, 3 }
  0x32   : > { %s136_s27 = scalar_lea.sflag (!%p130_p3), [#allocation4], %s534_s25  ;;  %s139_s28 = scalar_lea.vmem (!%p130_p3), [#allocation3], %s257_s26 }
  0x38   : > { %386 = dma.done.wait (%p472_p6), %s136_s27, 128  }
  0x39   : > { %388 = vsyncadd (%p472_p6), %s136_s27, 4294967168  ;;  %s160_s29 = sld [smem:[#allocation2]]  ;;  %v161_v0 = vld [vmem:[%s139_s28] sm:$0xff]  ;;  %s159_s30 = scalar_lea.vmem [#allocation6], %s257_s26 }
  0x3a   : > { %s181_s3 = sshll.u32 %s159_s30, 4  ;;  %s260_s4 = sshll.u32 %s450_s0, 7  ;;  %s543_s3 = int_to_ptr.vmem [resolvable:$true] %s181_s3 }
  0x3b   : > { %s548_s21 = scalar_lea.hbm %s592_s2, %s260_s4  ;;  %s168_s7 = scalar_lea.sflag [#allocation5], %s534_s25 }
  0x3c   : > { %s341_s8 = scalar_lea.vmem %s543_s3, 128  ;;  %p601_p11 = scmp.ne.s32.totalorder %s596_s22, 0 }
  0x3d   : > { %p342_p6 = scmp.ne.s32.totalorder %s543_s3, %s341_s8  ;;  %s410_s9 = smov [#allocation6]  }
  0x3e   : > { %s345_s0 = sshll.u32 %s410_s9, 4  ;;  %s346_s0 = int_to_ptr.vmem [resolvable:$false] %s345_s0 }
  0x3f   : > { %v162_v1 = vstv %s160_s29  ;;  %p343_p12 = pnand %p342_p6, %p601_p11  ;;  %s347_s10 = scalar_lea.vmem %s346_s0, 256 }
  0x40   : > { %v163_v2 = vmul.f32 %v162_v1, %v161_v0  ;;  %p348_p7 = scmp.lt.s32.totalorder %s543_s3, %s346_s0  ;;  %p349_p10 = scmp.lt.s32.totalorder %s347_s10, %s341_s8 }
  0x41   : > { %p344_p13 = pneg %p343_p12 }
  0x42   : > { %v164_v3 = vmul.f32 1.442695, %v163_v2  ;;  %p350_p2 = por %p349_p10, %p348_p7 }
  0x44   : > { %309 = vpow2.f32 %v164_v3  ;;  %p351_p4 = pnand %p350_p2, %p344_p13 }
  0x4e   : > { %v310_v4 = vpop.eup %309 }
  0x4f   : > { %166 = vst [vmem:[%s159_s30] sm:$0xff] %v310_v4 }
  0x50   : > { %354 = shalt.err (!%p351_p4)
}
  0x51   : > { %s355_s15 = scalar_lea.hbm %s548_s21, 128  ;;  %s359_s20 = scalar_lea.hbm %s592_s2, 256 }
  0x52   : > { %p356_p5 = scmp.ne.s32.totalorder %s548_s21, %s355_s15  ;;  %p360_p0 = scmp.lt.u32.totalorder %s548_s21, %s592_s2 }
  0x53   : > { %p361_p1 = scmp.lt.u32.totalorder %s359_s20, %s355_s15  ;;  %p363_p6 = scmp.lt.u32.totalorder %s355_s15, %s548_s21 }
  0x54   : > { %p357_p8 = pnand %p356_p5, %p601_p11 }
  0x55   : > { %p362_p3 = por %p361_p1, %p360_p0 }
  0x56   : > { %p358_p9 = pneg %p357_p8 }
  0x57   : > { %p364_p12 = por %p363_p6, %p362_p3 }
  0x59   : > { %p365_p13 = pnand %p364_p12, %p358_p9 }
  0x5b   : > { %368 = shalt.err (!%p365_p13)
}
  0x5c   : > { %265 = dma.vmem_to_hbm [thread:$0]  (%p601_p11), %s543_s3, 128, %s548_s21, %s168_s7  }
  0x5d PF: > { %s193_s26 = sand.u32 1, %s395_s11   ;;  %p602_p7 = scmp.ne.s32.totalorder %s597_s23, 0 }
  0x5e   : > { %p603_p10 = scmp.ge.s32.totalorder %s407_s14, 2  ;;  %s194_s27 = scalar_lea.sflag [#allocation5], %s193_s26 }
  0x60   : > { %p272_p2 = pnand %p603_p10, %p602_p7 }
  0x62   : > { %390 = dma.done.wait (!%p272_p2), %s194_s27, 128  }
  0x63   : > { %392 = vsyncadd (!%p272_p2), %s194_s27, 4294967168  ;;  %p16_p4 = scmp.ge.s32.totalorder %s454_s16, 4   ;;  %s604_s11 = smov %s399_s12 }
  0x64   : > { %s605_s12 = smov %s403_s13  ;;  %s606_s13 = smov %s466_s19 }
  0x65   : > { %s607_s14 = smov %s454_s16  ;;  %18 = sbr.rel (!%p16_p4) target bundleno = 7 (0x7), region = 73 }
  0x6c   :  { %199 = vsyncpa [#allocation4], 1 }
  0x6d   :  { %201 = vsyncpa [#allocation4 + $0x1], 1 }
  0x6e   :  { %202 = vsyncpa [#allocation5], 1 }
  0x6f   :  { %204 = vsyncpa [#allocation5 + $0x1], 1 }

</bundles_post_ra>
